<compile_context>
chip_gen: v7x
topology: tpu7x:2x2x1
jax: 0.10.0
libtpu: 0.0.40
codegen_flags: <defaults>
</compile_context>

<pallas_src>
import functools

import jax
import jax.numpy as jnp
from jax import lax
from jax.experimental import pallas as pl
from jax.experimental.pallas import tpu as pltpu


def _round_up(x: int, m: int) -> int:
    return ((x + m - 1) // m) * m


def _choose_tile(total: int, target: int, multiple: int) -> int:
    """Largest multiple of `multiple` that divides `total` and is <= target."""
    target = max(multiple, (min(target, total) // multiple) * multiple)
    for cand in range(target, multiple - 1, -multiple):
        if total % cand == 0:
            return cand
    return total


def _is_geometric(alphas) -> bool:
    return tuple(sorted(alphas)) == (0.5, 1.0, 2.0)


def _kernel_sum(d2, inv_m, alphas):
    """sum_a exp(-d2 / (2 * a * mean_d2)), minimizing EUP transcendentals."""
    if _is_geometric(alphas):
        half = jnp.exp(d2 * (-0.25 * inv_m))       # alpha = 2 term
        base = half * half                         # alpha = 1 term
        return base + base * base + half           # + alpha = 0.5 term
    acc = None
    for a in alphas:
        term = jnp.exp(d2 * (inv_m * jnp.float32(-0.5 / float(a))))
        acc = term if acc is None else acc + term
    return acc


def _mkmmd_pairwise_kernel(inv_ref, sq_col_ref, sq_lane_ref, panel_ref, out_ref,
                           *, alphas, batch_size, n_valid, linear, tm):
    """One row-tile of the full (N,N) weighted-kernel reduction.

    inv_ref     : (1, 1)     SMEM   1 / mean(pairwise d2)
    sq_col_ref  : (Np, 1)    VMEM   row norms, sublane layout
    sq_lane_ref : (1, Np)    VMEM   row norms, lane layout
    panel_ref   : (Np, Dp)   VMEM   resident feature panel
    out_ref     : (1, 8,128) VMEM   per-tile partial sum (broadcast scalar)
    """
    step = pl.program_id(0)
    np_ = panel_ref.shape[0]
    b = batch_size
    row_start = pl.multiple_of(step * tm, tm)

    # Row tile sliced out of the resident panel (panel is read from HBM once).
    x_row = panel_ref[pl.ds(row_start, tm), :]
    # Gram tile on the MXU; contract the lane dim of both operands (A @ B^T).
    # TODO(synk): optionally cast both operands to bf16 here for ~4x MXU rate
    # (accuracy trade-off for near-duplicate points).
    gram = lax.dot_general(x_row, panel_ref[...],
                           dimension_numbers=(((1,), (1,)), ((), ())),
                           preferred_element_type=jnp.float32)        # (tm, Np)

    sq_r = sq_col_ref[pl.ds(row_start, tm), :]                        # (tm, 1)
    sq_c = sq_lane_ref[...]                                           # (1, Np)
    inv_m = inv_ref[0, 0]

    d2 = jnp.maximum(sq_r + sq_c - 2.0 * gram, 0.0)                   # (tm, Np)
    kval = _kernel_sum(d2, inv_m, alphas)

    # Index-matrix weights from 1-D iotas; only the final combines are 2-D.
    gi = row_start + lax.broadcasted_iota(jnp.int32, (tm, 1), 0)      # (tm, 1)
    gj = lax.broadcasted_iota(jnp.int32, (1, np_), 1)                 # (1, Np)
    valid_i = gi < n_valid
    valid_j = gj < n_valid
    src_i = gi < b
    src_j = gj < b

    if linear:
        a_i = jnp.where(src_i, gi, gi - b)
        a_j = jnp.where(src_j, gj, gj - b)
        a_j = jnp.where(valid_j, a_j, -2)          # padded cols never match
        nxt = jnp.where(a_i + 1 == b, 0, a_i + 1)
        prv = jnp.where(a_i == 0, b - 1, a_i - 1)
        nxt = jnp.where(valid_i, nxt, -1)          # padded rows never match
        prv = jnp.where(valid_i, prv, -1)
        pos = (src_i == src_j) & (a_j == nxt)
        neg = (src_i & jnp.logical_not(src_j)) & ((a_j == nxt) | (a_j == prv))
        acc = (jnp.sum(jnp.where(pos, kval, 0.0))
               - jnp.sum(jnp.where(neg, kval, 0.0)))
        partial = acc * jnp.float32(1.0 / (b * (b - 1)))
    else:
        ci = jnp.where(valid_i, jnp.where(src_i, 0, 1), 2)   # {0,1}=valid, 2=pad
        cj = jnp.where(valid_j, jnp.where(src_j, 0, 1), 4)   # {0,1}=valid, 4=pad
        same = (ci == cj) & (gi != gj)    # same domain, off-diagonal, both valid
        cross = (ci + cj) == 1            # cross domain, both valid
        partial = (jnp.sum(jnp.where(same, kval, 0.0))
                   * jnp.float32(1.0 / (b * (b - 1)))
                   - jnp.sum(jnp.where(cross, kval, 0.0))
                   * jnp.float32(1.0 / (b * b)))

    out_ref[...] = jnp.broadcast_to(partial.astype(jnp.float32), (1, 8, 128))


def _mkmmd_linear_banded_kernel(inv_ref, s_ref, t_ref, sn_ref, tn_ref, out_ref,
                                *, alphas, batch_size):
    """Banded O(B*D) linear estimator: only the 4B non-zero index entries."""
    step = pl.program_id(0)
    tb = s_ref.shape[0]
    inv_m = inv_ref[0, 0]

    s = s_ref[...].astype(jnp.float32)
    t = t_ref[...].astype(jnp.float32)
    sn = sn_ref[...].astype(jnp.float32)    # z_s rolled by -1
    tn = tn_ref[...].astype(jnp.float32)    # z_t rolled by -1

    def pair_d2(a, c):
        diff = a - c
        return jnp.sum(diff * diff, axis=1, keepdims=True)            # (tb, 1)

    contrib = (_kernel_sum(pair_d2(s, sn), inv_m, alphas)
               + _kernel_sum(pair_d2(t, tn), inv_m, alphas)
               - _kernel_sum(pair_d2(s, tn), inv_m, alphas)
               - _kernel_sum(pair_d2(sn, t), inv_m, alphas))           # (tb, 1)

    gi = step * tb + lax.broadcasted_iota(jnp.int32, (tb, 1), 0)
    contrib = jnp.where(gi < batch_size, contrib, 0.0)                 # mask pad
    partial = (jnp.sum(contrib)
               * jnp.float32(1.0 / (batch_size * (batch_size - 1))))
    out_ref[...] = jnp.broadcast_to(partial.astype(jnp.float32), (1, 8, 128))


def mkmmd_loss(z_s, z_t, *, alphas=(0.5, 1.0, 2.0), linear=True, row_tile=None,
               banded=None):
    """MK-MMD forward pass.  z_s, z_t: (B, D) feature matrices."""
    assert z_s.ndim == 2 and z_s.shape == z_t.shape
    b, d = z_s.shape
    assert b >= 2, "batch_size must be >= 2"
    n = 2 * b
    alphas_t = tuple(float(a) for a in alphas)
    # The banded estimator matches the PyTorch index matrix only for b > 2
    # (the b == 2 matrix has overwritten entries) -> fall back otherwise.
    if banded is None:
        banded = True
    banded = bool(banded) and bool(linear) and b > 2

    feats = jnp.concatenate([z_s, z_t], axis=0)             # keep caller dtype
    feats_f32 = feats.astype(jnp.float32)

    # sigma^2 statistic hoisted out of the kernel: mean over all N^2 pairwise
    # squared distances, computed analytically on centered features (O(N*D)).
    mu = jnp.mean(feats_f32, axis=0, keepdims=True)
    xc = feats_f32 - mu
    mean_d2 = 2.0 * jnp.sum(xc * xc) / jnp.float32(n)
    # NOTE: the 1e-12 floor avoids 0/0 for degenerate all-identical inputs
    # (the PyTorch reference would produce nan there).
    inv_m = (1.0 / jnp.maximum(mean_d2, 1e-12)).reshape(1, 1).astype(jnp.float32)

    itemsize = jnp.dtype(feats.dtype).itemsize
    sub = {4: 8, 2: 16, 1: 32}.get(itemsize, 8)              # sublane multiple
    d_pad = _round_up(d, 128)                                # lane-dense features

    try:
        vmem_cap = int(getattr(pltpu.get_tpu_info(), "vmem_capacity_bytes",
                               64 << 20))
    except Exception:
        vmem_cap = 64 << 20
    vmem_cap_85 = max(int(vmem_cap * 0.85), 16 << 20)

    dim_sem = ("parallel",)      # independent row tiles -> both TCs on v7x

    if banded:
        b_pad = _round_up(b, sub)
        tb = _choose_tile(b_pad, row_tile or 256, sub)
        grid = (b_pad // tb,)
        pad = ((0, b_pad - b), (0, d_pad - d))
        zs_p = jnp.pad(z_s, pad)
        zt_p = jnp.pad(z_t, pad)
        zsn_p = jnp.pad(jnp.roll(z_s, -1, axis=0), pad)
        ztn_p = jnp.pad(jnp.roll(z_t, -1, axis=0), pad)

        kernel = functools.partial(_mkmmd_linear_banded_kernel,
                                   alphas=alphas_t, batch_size=b)
        row_specs = [pl.BlockSpec((tb, d_pad), lambda i: (i, 0))
                     for _ in range(4)]
        vmem_need = (4 * 2 * tb * d_pad * max(itemsize, 4)
                     + 8 * tb * d_pad * 4 + (4 << 20))
        vmem_limit = int(min(max(vmem_need, 32 << 20), vmem_cap_85))

        out = pl.pallas_call(
            kernel,
            grid=grid,
            in_specs=[pl.BlockSpec(memory_space=pltpu.SMEM)] + row_specs,
            out_specs=pl.BlockSpec((1, 8, 128), lambda i: (i, 0, 0)),
            out_shape=jax.ShapeDtypeStruct((grid[0], 8, 128), jnp.float32),
            compiler_params=pltpu.CompilerParams(
                dimension_semantics=dim_sem, vmem_limit_bytes=vmem_limit),
        )(inv_m, zs_p, zt_p, zsn_p, ztn_p)
        return jnp.sum(out[:, 0, 0])

    # Full pairwise-matrix path (required for linear=False).
    n_pad = _round_up(n, 128)                  # Np = lane dim of the tiles
    tm = _choose_tile(n_pad, row_tile or 256, sub)
    grid = (n_pad // tm,)

    feats_p = jnp.pad(feats, ((0, n_pad - n), (0, d_pad - d)))
    sq = jnp.pad(jnp.sum(feats_f32 * feats_f32, axis=1), (0, n_pad - n))
    sq_col = sq.reshape(n_pad, 1)              # row norms, sublane layout
    sq_lane = sq.reshape(1, n_pad)             # row norms, lane layout

    kernel = functools.partial(_mkmmd_pairwise_kernel, alphas=alphas_t,
                               batch_size=b, n_valid=n, linear=bool(linear),
                               tm=tm)

    panel_bytes = n_pad * d_pad * itemsize
    vmem_need = (panel_bytes + 4 * n_pad * 4 * 2 + 6 * tm * n_pad * 4
                 + tm * d_pad * max(itemsize, 4) + (4 << 20))
    vmem_limit = int(min(max(vmem_need, 32 << 20), vmem_cap_85))
    # TODO(synk): if the resident (Np, Dp) panel exceeds the VMEM budget (very
    # large N*D, esp. on v7x's 64 MiB), a second grid axis tiling the panel
    # rows (column tiles of the pairwise matrix) would be needed.

    def _run(single_buffer_panel):
        if single_buffer_panel:
            panel_spec = pl.BlockSpec((n_pad, d_pad), lambda i: (0, 0),
                                      pipeline_mode=pl.Buffered(1))
        else:
            panel_spec = pl.BlockSpec((n_pad, d_pad), lambda i: (0, 0))
        return pl.pallas_call(
            kernel,
            grid=grid,
            in_specs=[
                pl.BlockSpec(memory_space=pltpu.SMEM),          # 1/mean_d2
                pl.BlockSpec((n_pad, 1), lambda i: (0, 0)),     # row norms (col)
                pl.BlockSpec((1, n_pad), lambda i: (0, 0)),     # row norms (lane)
                panel_spec,                                     # resident panel
            ],
            out_specs=pl.BlockSpec((1, 8, 128), lambda i: (i, 0, 0)),
            out_shape=jax.ShapeDtypeStruct((grid[0], 8, 128), jnp.float32),
            compiler_params=pltpu.CompilerParams(
                dimension_semantics=dim_sem, vmem_limit_bytes=vmem_limit),
        )(inv_m, sq_col, sq_lane, feats_p)

    try:
        out = _run(True)     # single-buffer the constant-index resident panel
    except Exception:        # pragma: no cover - fallback if Buffered(1) rejected
        out = _run(False)

    total = jnp.sum(out[:, 0, 0])
    if linear:
        return total
    return total + jnp.float32(2.0 / (b - 1))


# ----------------------------------------------------------------------------
# Pure-JAX reference mirroring the PyTorch module (index matrix materialized).
# ----------------------------------------------------------------------------
def _make_index_matrix(batch_size: int, linear: bool) -> jnp.ndarray:
    n = 2 * batch_size
    m = [[0.0] * n for _ in range(n)]
    if linear:
        for i in range(batch_size):
            s1, s2 = i, (i + 1) % batch_size
            t1, t2 = s1 + batch_size, s2 + batch_size
            m[s1][s2] = 1.0 / float(batch_size)
            m[t1][t2] = 1.0 / float(batch_size)
            m[s1][t2] = -1.0 / float(batch_size)
            m[s2][t1] = -1.0 / float(batch_size)
    else:
        for i in range(batch_size):
            for j in range(batch_size):
                if i != j:
                    m[i][j] = 1.0 / float(batch_size * (batch_size - 1))
                    m[i + batch_size][j + batch_size] = 1.0 / float(
                        batch_size * (batch_size - 1))
        for i in range(batch_size):
            for j in range(batch_size):
                m[i][j + batch_size] = -1.0 / float(batch_size * batch_size)
                m[i + batch_size][j] = -1.0 / float(batch_size * batch_size)
    return jnp.asarray(m, dtype=jnp.float32)


def _mkmmd_reference(z_s, z_t, *, alphas=(0.5, 1.0, 2.0), linear=True):
    b = z_s.shape[0]
    x = jnp.concatenate([z_s, z_t], axis=0).astype(jnp.float32)
    d2 = jnp.sum((x[None, :, :] - x[:, None, :]) ** 2, axis=2)
    km = jnp.zeros_like(d2)
    for a in alphas:
        sigma_sq = a * jnp.mean(d2)
        km = km + jnp.exp(-d2 / (2.0 * sigma_sq))
    idx = _make_index_matrix(b, linear)
    s = jnp.sum(km * idx)
    if linear:
        return s / float(b - 1)
    return s + 2.0 / float(b - 1)


if __name__ == "__main__":
    key = jax.random.PRNGKey(0)
    k1, k2 = jax.random.split(key)
    B, D = 8, 32
    z_s = jax.random.normal(k1, (B, D), dtype=jnp.float32)
    z_t = jax.random.normal(k2, (B, D), dtype=jnp.float32) + 0.5

    checks = [
        # default config: banded O(B*D) linear path, geometric alphas
        dict(alphas=(0.5, 1.0, 2.0), linear=True),
        # full-matrix linear path, multi-step grid (many row tiles)
        dict(alphas=(0.5, 1.0, 2.0), linear=True, banded=False, row_tile=8),
        # non-linear index weights (full-matrix path)
        dict(alphas=(0.5, 1.0, 2.0), linear=False),
        # generic-alpha branch, banded linear
        dict(alphas=(1.0, 3.0), linear=True),
        # generic-alpha branch, full-matrix non-linear
        dict(alphas=(1.0, 3.0), linear=False),
    ]
    for cfg in checks:
        loss = mkmmd_loss(z_s, z_t, **cfg)
        loss = jax.block_until_ready(loss)
        ref = _mkmmd_reference(z_s, z_t, alphas=cfg["alphas"],
                               linear=cfg["linear"])
        assert jnp.allclose(loss, ref, rtol=1e-3, atol=1e-5), (cfg, loss, ref)

    print("KERNEL_OK")
</pallas_src>

<mosaic_0001>
module attributes {stable_mosaic.version = 11 : i64} {
  func.func @_mkmmd_linear_banded_kernel(%arg0: i32, %arg1: memref<1x1xf32, #tpu.memory_space<smem>>, %arg2: memref<8x128xf32, #tpu.memory_space<vmem>>, %arg3: memref<8x128xf32, #tpu.memory_space<vmem>>, %arg4: memref<8x128xf32, #tpu.memory_space<vmem>>, %arg5: memref<8x128xf32, #tpu.memory_space<vmem>>, %arg6: memref<1x8x128xf32, #tpu.memory_space<vmem>>) attributes {dimension_semantics = [#tpu.dimension_semantics<parallel>], iteration_bounds = array<i64: 1>, scalar_prefetch = 0 : i64, scratch_operands = 0 : i64, tpu.core_type = #tpu.core_type<tc>, window_params = [{transform_indices = @transform_0, window_bounds = array<i64: 1, 1>}, {transform_indices = @transform_1, window_bounds = array<i64: 8, 128>}, {transform_indices = @transform_2, window_bounds = array<i64: 8, 128>}, {transform_indices = @transform_3, window_bounds = array<i64: 8, 128>}, {transform_indices = @transform_4, window_bounds = array<i64: 8, 128>}, {transform_indices = @transform_5, window_bounds = array<i64: 1, 8, 128>}]} {
    %c0 = arith.constant 0 : index
    %c0_0 = arith.constant 0 : index
    %0 = memref.load %arg1[%c0, %c0_0] : memref<1x1xf32, #tpu.memory_space<smem>>
    %c0_1 = arith.constant 0 : index
    %c0_2 = arith.constant 0 : index
    %1 = vector.load %arg2[%c0_1, %c0_2] : memref<8x128xf32, #tpu.memory_space<vmem>>, vector<8x128xf32>
    %c0_3 = arith.constant 0 : index
    %c0_4 = arith.constant 0 : index
    %2 = vector.load %arg3[%c0_3, %c0_4] : memref<8x128xf32, #tpu.memory_space<vmem>>, vector<8x128xf32>
    %c0_5 = arith.constant 0 : index
    %c0_6 = arith.constant 0 : index
    %3 = vector.load %arg4[%c0_5, %c0_6] : memref<8x128xf32, #tpu.memory_space<vmem>>, vector<8x128xf32>
    %c0_7 = arith.constant 0 : index
    %c0_8 = arith.constant 0 : index
    %4 = vector.load %arg5[%c0_7, %c0_8] : memref<8x128xf32, #tpu.memory_space<vmem>>, vector<8x128xf32>
    %5 = arith.subf %1, %3 : vector<8x128xf32>
    %6 = arith.mulf %5, %5 : vector<8x128xf32>
    %cst = arith.constant dense<0.000000e+00> : vector<8xf32>
    %7 = vector.multi_reduction <add>, %6, %cst [1] : vector<8x128xf32> to vector<8xf32>
    %8 = vector.shape_cast %7 : vector<8xf32> to vector<8x1xf32>
    %cst_9 = arith.constant -2.500000e-01 : f32
    %9 = arith.mulf %cst_9, %0 : f32
    %10 = vector.broadcast %9 : f32 to vector<8x1xf32>
    %11 = arith.mulf %8, %10 : vector<8x1xf32>
    %12 = math.exp %11 : vector<8x1xf32>
    %13 = arith.mulf %12, %12 : vector<8x1xf32>
    %14 = arith.mulf %13, %13 : vector<8x1xf32>
    %15 = arith.addf %13, %14 : vector<8x1xf32>
    %16 = arith.addf %15, %12 : vector<8x1xf32>
    %17 = arith.subf %2, %4 : vector<8x128xf32>
    %18 = arith.mulf %17, %17 : vector<8x128xf32>
    %cst_10 = arith.constant dense<0.000000e+00> : vector<8xf32>
    %19 = vector.multi_reduction <add>, %18, %cst_10 [1] : vector<8x128xf32> to vector<8xf32>
    %20 = vector.shape_cast %19 : vector<8xf32> to vector<8x1xf32>
    %cst_11 = arith.constant -2.500000e-01 : f32
    %21 = arith.mulf %cst_11, %0 : f32
    %22 = vector.broadcast %21 : f32 to vector<8x1xf32>
    %23 = arith.mulf %20, %22 : vector<8x1xf32>
    %24 = math.exp %23 : vector<8x1xf32>
    %25 = arith.mulf %24, %24 : vector<8x1xf32>
    %26 = arith.mulf %25, %25 : vector<8x1xf32>
    %27 = arith.addf %25, %26 : vector<8x1xf32>
    %28 = arith.addf %27, %24 : vector<8x1xf32>
    %29 = arith.addf %16, %28 : vector<8x1xf32>
    %30 = arith.subf %1, %4 : vector<8x128xf32>
    %31 = arith.mulf %30, %30 : vector<8x128xf32>
    %cst_12 = arith.constant dense<0.000000e+00> : vector<8xf32>
    %32 = vector.multi_reduction <add>, %31, %cst_12 [1] : vector<8x128xf32> to vector<8xf32>
    %33 = vector.shape_cast %32 : vector<8xf32> to vector<8x1xf32>
    %cst_13 = arith.constant -2.500000e-01 : f32
    %34 = arith.mulf %cst_13, %0 : f32
    %35 = vector.broadcast %34 : f32 to vector<8x1xf32>
    %36 = arith.mulf %33, %35 : vector<8x1xf32>
    %37 = math.exp %36 : vector<8x1xf32>
    %38 = arith.mulf %37, %37 : vector<8x1xf32>
    %39 = arith.mulf %38, %38 : vector<8x1xf32>
    %40 = arith.addf %38, %39 : vector<8x1xf32>
    %41 = arith.addf %40, %37 : vector<8x1xf32>
    %42 = arith.subf %29, %41 : vector<8x1xf32>
    %43 = arith.subf %3, %2 : vector<8x128xf32>
    %44 = arith.mulf %43, %43 : vector<8x128xf32>
    %cst_14 = arith.constant dense<0.000000e+00> : vector<8xf32>
    %45 = vector.multi_reduction <add>, %44, %cst_14 [1] : vector<8x128xf32> to vector<8xf32>
    %46 = vector.shape_cast %45 : vector<8xf32> to vector<8x1xf32>
    %cst_15 = arith.constant -2.500000e-01 : f32
    %47 = arith.mulf %cst_15, %0 : f32
    %48 = vector.broadcast %47 : f32 to vector<8x1xf32>
    %49 = arith.mulf %46, %48 : vector<8x1xf32>
    %50 = math.exp %49 : vector<8x1xf32>
    %51 = arith.mulf %50, %50 : vector<8x1xf32>
    %52 = arith.mulf %51, %51 : vector<8x1xf32>
    %53 = arith.addf %51, %52 : vector<8x1xf32>
    %54 = arith.addf %53, %50 : vector<8x1xf32>
    %55 = arith.subf %42, %54 : vector<8x1xf32>
    %c8_i32 = arith.constant 8 : i32
    %56 = arith.muli %arg0, %c8_i32 : i32
    %57 = tpu.iota {dimensions = array<i32: 0>} : vector<8x1xi32>
    %58 = vector.broadcast %56 : i32 to vector<8x1xi32>
    %59 = arith.addi %58, %57 : vector<8x1xi32>
    %c8_i32_16 = arith.constant 8 : i32
    %60 = vector.broadcast %c8_i32_16 : i32 to vector<8x1xi32>
    %61 = arith.cmpi slt, %59, %60 : vector<8x1xi32>
    %cst_17 = arith.constant 0.000000e+00 : f32
    %62 = vector.broadcast %cst_17 : f32 to vector<8x1xf32>
    %63 = arith.select %61, %55, %62 : vector<8x1xi1>, vector<8x1xf32>
    %64 = vector.shape_cast %63 : vector<8x1xf32> to vector<1x8x1xf32>
    %cst_18 = arith.constant dense<0.000000e+00> : vector<1xf32>
    %65 = vector.multi_reduction <add>, %64, %cst_18 [1, 2] : vector<1x8x1xf32> to vector<1xf32>
    %66 = vector.shape_cast %65 : vector<1xf32> to vector<1x1x1xf32>
    %67 = vector.extract %66[0, 0, 0] : f32 from vector<1x1x1xf32>
    %cst_19 = arith.constant 0.0178571437 : f32
    %68 = arith.mulf %67, %cst_19 : f32
    %69 = vector.broadcast %68 : f32 to vector<1x8x128xf32>
    %c0_20 = arith.constant 0 : index
    %c0_21 = arith.constant 0 : index
    %c0_22 = arith.constant 0 : index
    %70 = vector.load %arg6[%c0_20, %c0_21, %c0_22] : memref<1x8x128xf32, #tpu.memory_space<vmem>>, vector<1x8x128xf32>
    tpu.vector_store %arg6[%c0_20, %c0_21, %c0_22], %69 {strides = array<i32>} : memref<1x8x128xf32, #tpu.memory_space<vmem>>, vector<1x8x128xf32>,
    return
  }
  func.func @transform_0(%arg0: i32) -> (i32, i32) {
    %c0_i32 = arith.constant 0 : i32
    %c0_i32_0 = arith.constant 0 : i32
    %c0_i32_1 = arith.constant 0 : i32
    return %c0_i32, %c0_i32_0 : i32, i32
  }
  func.func @transform_1(%arg0: i32) -> (i32, i32) {
    %c0_i32 = arith.constant 0 : i32
    %c0_i32_0 = arith.constant 0 : i32
    return %arg0, %c0_i32 : i32, i32
  }
  func.func @transform_2(%arg0: i32) -> (i32, i32) {
    %c0_i32 = arith.constant 0 : i32
    %c0_i32_0 = arith.constant 0 : i32
    return %arg0, %c0_i32 : i32, i32
  }
  func.func @transform_3(%arg0: i32) -> (i32, i32) {
    %c0_i32 = arith.constant 0 : i32
    %c0_i32_0 = arith.constant 0 : i32
    return %arg0, %c0_i32 : i32, i32
  }
  func.func @transform_4(%arg0: i32) -> (i32, i32) {
    %c0_i32 = arith.constant 0 : i32
    %c0_i32_0 = arith.constant 0 : i32
    return %arg0, %c0_i32 : i32, i32
  }
  func.func @transform_5(%arg0: i32) -> (i32, i32, i32) {
    %c0_i32 = arith.constant 0 : i32
    %c0_i32_0 = arith.constant 0 : i32
    %c0_i32_1 = arith.constant 0 : i32
    return %arg0, %c0_i32, %c0_i32_0 : i32, i32, i32
  }
}

</mosaic_0001>

<bundles_post_ra>
// kernel: tpu_custom_call.1
= control target key start
LH: loop header
LB: loop body
LE: loop exit
PB: predicated region body
PF: predicated region fallthrough
CT: control target
= control target key end

     0   :  { %11 = vsyncpa [#allocation4], 0  ;;  %s344_s0 = inlined_call_operand.<no memory space> [shape: f32[1,1], index: 0, kind: input, shape index: {}]   ;;  %s345_s1 = inlined_call_operand.hbm [shape: f32[8,128], index: 1, kind: input, shape index: {}]   ;;  %s346_s2 = inlined_call_operand.hbm [shape: f32[8,128], index: 2, kind: input, shape index: {}]   ;;  %s347_s3 = inlined_call_operand.vmem [shape: f32[8,128], index: 3, kind: input, shape index: {}]   ;;  %s348_s4 = inlined_call_operand.hbm [shape: f32[8,128], index: 4, kind: input, shape index: {}]   ;;  %s349_s5 = inlined_call_operand.hbm [shape: f32[1,8,128], index: 5, kind: output, shape index: {}]  }
   0x1   :  { %12 = vsyncpa [#allocation7], 0 }
   0x2   :  { %13 = vsyncpa [#allocation5], 0  ;;  %s256_s18 = smov [#allocation6]   ;;  %s257_s20 = smov [#allocation3]  }
   0x3   :  { %s32_s19 = sshll.u32 %s256_s18, 4  ;;  %s22_s21 = sshll.u32 %s257_s20, 4  ;;  %s33_s19 = int_to_ptr.vmem [resolvable:$true] %s32_s19  ;;  %s23_s21 = int_to_ptr.vmem [resolvable:$true] %s22_s21 }
   0x4   :  { %s162_s24 = scalar_lea.hbm %s346_s2, 128 }
   0x5   :  { %p163_p0 = scmp.ne.s32.totalorder %s346_s2, %s162_s24  ;;  %p166_p1 = scmp.lt.u32.totalorder %s162_s24, %s346_s2 }
   0x7   :  { %p168_p2 = pnand %p166_p1, %p163_p0 }
   0x9   :  { %171 = shalt.err (!%p168_p2)
}
   0xa   :  { %s172_s29 = scalar_lea.vmem %s33_s19, 128  ;;  %p177_p4 = scmp.lt.s32.totalorder %s33_s19, %s33_s19 }
   0xb   :  { %p173_p3 = scmp.ne.s32.totalorder %s33_s19, %s172_s29  ;;  %p178_p5 = scmp.lt.s32.totalorder %s172_s29, %s172_s29 }
   0xd   :  { %p179_p6 = por %p178_p5, %p177_p4 }
   0xf   :  { %p180_p7 = pnand %p179_p6, %p173_p3 }
  0x11   :  { %183 = shalt.err (!%p180_p7)
}
  0x12   :  { %35 = dma.hbm_to_vmem [thread:$0]  %s346_s2, 128, %s33_s19, [#allocation7]  }
  0x13   :  { %s184_s9 = scalar_lea.hbm %s345_s1, 128 }
  0x14   :  { %p185_p8 = scmp.ne.s32.totalorder %s345_s1, %s184_s9  ;;  %p188_p9 = scmp.lt.u32.totalorder %s184_s9, %s345_s1 }
  0x16   :  { %p190_p10 = pnand %p188_p9, %p185_p8 }
  0x18   :  { %193 = shalt.err (!%p190_p10)
}
  0x19   :  { %s194_s14 = scalar_lea.vmem %s23_s21, 128  ;;  %p199_p12 = scmp.lt.s32.totalorder %s23_s21, %s23_s21 }
  0x1a   :  { %p195_p11 = scmp.ne.s32.totalorder %s23_s21, %s194_s14  ;;  %p200_p13 = scmp.lt.s32.totalorder %s194_s14, %s194_s14 }
  0x1c   :  { %p201_p0 = por %p200_p13, %p199_p12 }
  0x1e   :  { %p202_p1 = pnand %p201_p0, %p195_p11 }
  0x20   :  { %205 = shalt.err (!%p202_p1)
}
  0x21   :  { %25 = dma.hbm_to_vmem [thread:$0]  %s345_s1, 128, %s23_s21, [#allocation4]  }
  0x22   :  { %s258_s16 = smov [#allocation8]   ;;  %s206_s20 = scalar_lea.hbm %s348_s4, 128 }
  0x23   :  { %s44_s17 = sshll.u32 %s258_s16, 4  ;;  %p207_p2 = scmp.ne.s32.totalorder %s348_s4, %s206_s20  ;;  %s45_s17 = int_to_ptr.vmem [resolvable:$true] %s44_s17 }
  0x24   :  { %p210_p3 = scmp.lt.u32.totalorder %s206_s20, %s348_s4 }
  0x26   :  { %p212_p4 = pnand %p210_p3, %p207_p2 }
  0x28   :  { %215 = shalt.err (!%p212_p4)
}
  0x29   :  { %s216_s26 = scalar_lea.vmem %s45_s17, 128  ;;  %p221_p6 = scmp.lt.s32.totalorder %s45_s17, %s45_s17 }
  0x2a   :  { %p217_p5 = scmp.ne.s32.totalorder %s45_s17, %s216_s26  ;;  %p222_p7 = scmp.lt.s32.totalorder %s216_s26, %s216_s26 }
  0x2c   :  { %p223_p8 = por %p222_p7, %p221_p6 }
  0x2e   :  { %p224_p9 = pnand %p223_p8, %p217_p5 }
  0x30   :  { %227 = shalt.err (!%p224_p9)
}
  0x31   :  { %47 = dma.hbm_to_vmem [thread:$0]  %s348_s4, 128, %s45_s17, [#allocation7]  }
  0x32   :  { %250 = dma.done.wait [#allocation4], 128  }
  0x33   :  { %251 = vsyncadd [#allocation4], 4294967168 }
  0x34   :  { %252 = dma.done.wait [#allocation7], 256  }
  0x35   :  { %253 = vsyncadd [#allocation7], 4294967040  ;;  %v58_v0 = vld [vmem:[#allocation3] sm:$0xff]  ;;  %v61_v1 = vld [vmem:[#allocation8] sm:$0xff]  ;;  %s66_s30 = smul.f32 -0.25, %s344_s0  ;;  %vm118_vm0 = vcmask 7168  }
  0x36   :  { %v60_v2 = vld [vmem:[%s347_s3] sm:$0xff]  ;;  %v87_v3 = vsub.f32 %v58_v0, %v61_v1  ;;  %v59_v5 = vld [vmem:[#allocation6] sm:$0xff]  ;;  %s259_s0 = smov [#allocation9]  }
  0x37   :  { %v62_v4 = vsub.f32 %v58_v0, %v60_v2  ;;  %v99_v6 = vsub.f32 %v60_v2, %v59_v5  ;;  %v75_v7 = vsub.f32 %v59_v5, %v61_v1  ;;  %v67_v12 = vstv %s66_s30  ;;  %s138_s3 = sshll.u32 %s259_s0, 4  ;;  %s139_s3 = int_to_ptr.vmem [resolvable:$true] %s138_s3 }
  0x38   :  { %v88_v8 = vmul.f32 %v87_v3, %v87_v3  ;;  %s228_s8 = scalar_lea.vmem %s139_s3, 128  ;;  %p233_p11 = scmp.lt.s32.totalorder %s139_s3, %s139_s3 }
  0x39   :  { %v63_v9 = vmul.f32 %v62_v4, %v62_v4  ;;  %v100_v10 = vmul.f32 %v99_v6, %v99_v6  ;;  %v76_v11 = vmul.f32 %v75_v7, %v75_v7  ;;  %p229_p10 = scmp.ne.s32.totalorder %s139_s3, %s228_s8  ;;  %p234_p12 = scmp.lt.s32.totalorder %s228_s8, %s228_s8 }
  0x3a   :  { %89 = vadd.xlane.f32.xlu1 %v88_v8 }
  0x3b   :  { %64 = vadd.xlane.f32.xlu0 %v63_v9  ;;  %p235_p13 = por %p234_p12, %p233_p11 }
  0x3d   :  { %p236_p0 = pnand %p235_p13, %p229_p10 }
  0x3e   :  { %101 = vadd.xlane.f32.xlu1 %v100_v10 }
  0x3f   :  { %77 = vadd.xlane.f32.xlu0 %v76_v11 }
  0xc7   :  { %v90_v13 = vpop.xlane.xlu1 %89 }
  0xc8   :  { %v65_v14 = vpop.xlane.xlu0 %64  ;;  %v91_v15 = vmul.f32 %v90_v13, %v67_v12 }
  0xc9   :  { %v68_v16 = vmul.f32 %v67_v12, %v65_v14 }
  0xca   :  { %v92_v17 = vmul.f32 1.442695, %v91_v15 }
  0xcb   :  { %v69_v18 = vmul.f32 1.442695, %v68_v16  ;;  %v102_v19 = vpop.xlane.xlu1 %101 }
  0xcc   :  { %v78_v20 = vpop.xlane.xlu0 %77  ;;  %154 = vpow2.f32 %v92_v17  ;;  %v103_v21 = vmul.f32 %v102_v19, %v67_v12 }
  0xcd   :  { %v79_v22 = vmul.f32 %v78_v20, %v67_v12  ;;  %156 = vpow2.f32 %v69_v18 }
  0xce   :  { %v104_v23 = vmul.f32 1.442695, %v103_v21 }
  0xcf   :  { %v80_v24 = vmul.f32 1.442695, %v79_v22 }
  0xd0   :  { %158 = vpow2.f32 %v104_v23 }
  0xd1   :  { %160 = vpow2.f32 %v80_v24 }
  0xd6   :  { %v155_v25 = vpop.eup %154 }
  0xd7   :  { %v157_v26 = vpop.eup %156  ;;  %v94_v28 = vmul.f32 %v155_v25, %v155_v25 }
  0xd8   :  { %v71_v27 = vmul.f32 %v157_v26, %v157_v26 }
  0xd9   :  { %v95_v34 = vmul.f32 %v94_v28, %v94_v28 }
  0xda   :  { %v159_v29 = vpop.eup %158  ;;  %v72_v30 = vmul.f32 %v71_v27, %v71_v27 }
  0xdb   :  { %v161_v31 = vpop.eup %160  ;;  %v106_v32 = vmul.f32 %v159_v29, %v159_v29  ;;  %v96_v39 = vadd.f32 %v95_v34, %v94_v28 }
  0xdc   :  { %v82_v33 = vmul.f32 %v161_v31, %v161_v31  ;;  %v73_v35 = vadd.f32 %v72_v30, %v71_v27 }
  0xdd   :  { %v107_v37 = vmul.f32 %v106_v32, %v106_v32  ;;  %v97_v44 = vadd.f32 %v155_v25, %v96_v39 }
  0xde   :  { %v83_v36 = vmul.f32 %v82_v33, %v82_v33  ;;  %v74_v40 = vadd.f32 %v157_v26, %v73_v35 }
  0xdf   :  { %v108_v42 = vadd.f32 %v107_v37, %v106_v32 }
  0xe0   :  { %v84_v38 = vadd.f32 %v83_v36, %v82_v33 }
  0xe1   :  { %v109_v46 = vadd.f32 %v159_v29, %v108_v42 }
  0xe2   :  { %v85_v41 = vadd.f32 %v161_v31, %v84_v38 }
  0xe4   :  { %v86_v43 = vadd.f32 %v85_v41, %v74_v40 }
  0xe6   :  { %v98_v45 = vsub.f32 %v86_v43, %v97_v44 }
  0xe8   :  { %v110_v47 = vsub.f32 %v98_v45, %v109_v46 }
  0xea   :  { %v119_v48 = vsel %vm118_vm0, %v110_v47, 0.0 }
  0xeb   :  { %120 = vadd.xlane.f32.xlu0 %v119_v48 }
 0x178   :  { %v121_v49 = vpop.xlane.xlu0 %120 }
 0x179   :  { %v122_v50 = vrot.slane %v121_v49, 4 }
 0x17b   :  { %v123_v51 = vadd.f32 %v122_v50, %v121_v49 }
 0x17d   :  { %v124_v52 = vrot.slane %v123_v51, 2 }
 0x17f   :  { %v125_v53 = vadd.f32 %v124_v52, %v123_v51 }
 0x181   :  { %v126_v54 = vrot.slane %v125_v53, 1 }
 0x183   :  { %v127_v55 = vadd.f32 %v126_v54, %v125_v53 }
 0x185   :  { %148 = vpush %v127_v55 }
 0x1b6   :  { %s149_s6 = spop %148 }
 0x1b7   :  { %s129_s7 = smul.f32 0.017857144, %s149_s6 }
 0x1b9   :  { %v130_v56 = vstv %s129_s7 }
 0x1ba   :  { %131 = vst [vmem:[#allocation9] sm:$0xff] %v130_v56 }
 0x1bb   :  { %239 = shalt.err (!%p236_p0)
}
 0x1bc   :  { %s240_s11 = scalar_lea.hbm %s349_s5, 128 }
 0x1bd   :  { %p241_p1 = scmp.ne.s32.totalorder %s349_s5, %s240_s11  ;;  %p244_p2 = scmp.lt.u32.totalorder %s240_s11, %s349_s5 }
 0x1bf   :  { %p246_p3 = pnand %p244_p2, %p241_p1 }
 0x1c1   :  { %249 = shalt.err (!%p246_p3)
}
 0x1c2   :  { %141 = dma.vmem_to_hbm [thread:$0]  %s139_s3, 128, %s349_s5, [#allocation5]  }
 0x1c3   :  { %254 = dma.done.wait [#allocation5], 128  }
 0x1c4   :  { %255 = vsyncadd [#allocation5], 4294967168 }
 0x1c5   :  { %145 = vsyncpa [#allocation4], 1 }
 0x1c6   :  { %146 = vsyncpa [#allocation7], 1 }
 0x1c7   :  { %147 = vsyncpa [#allocation5], 1 }

</bundles_post_ra>
